<compile_context>
chip_gen: v5e
topology: v5e:2x2
jax: 0.10.0
libtpu: 0.0.40
codegen_flags: <defaults>
</compile_context>

<pallas_src>
import functools

import jax
import jax.numpy as jnp
from jax import lax
from jax.experimental import pallas as pl
from jax.experimental.pallas import tpu as pltpu


def _contrastive_loss_kernel(x_ref, lab_ref, out_ref, *, margin):
    # x_ref  : (n, p) embeddings for instance b (leading batch dim squeezed)
    # lab_ref: (1, n) int32 labels for instance b
    # out_ref: (B, 1) float32 SMEM buffer (whole array resident; write slot b)
    b = pl.program_id(0)

    x = x_ref[...]                      # native dtype (f32 or bf16) straight to MXU
    n = x.shape[0]
    inv_d = 1.0 / x.shape[1]            # static dim -> multiply, not divide

    # Gram matrix on the MXU: contract the shared feature axis directly so Mosaic
    # does not materialize x.T in VMEM; accumulate in f32.
    g = lax.dot_general(
        x, x,
        dimension_numbers=(((1,), (1,)), ((), ())),
        preferred_element_type=jnp.float32,
    )                                   # (n, n) f32

    row = lax.broadcasted_iota(jnp.int32, (n, n), 0)
    col = lax.broadcasted_iota(jnp.int32, (n, n), 1)
    is_diag = row == col

    # Row squared norms from diag(G): no extra x*x pass, no r.T transpose.
    diag = jnp.where(is_diag, g, 0.0)
    r_col = jnp.sum(diag, axis=1, keepdims=True)   # (n, 1)
    r_row = jnp.sum(diag, axis=0, keepdims=True)   # (1, n)

    # Pairwise squared distances, clamped and normalized by dimension.
    dw = jnp.maximum(r_col - 2.0 * g + r_row, 0.0) * jnp.float32(inv_d)

    # Label equality mask. One label input; tiny (1, n) -> (n, 1) transpose
    # in-kernel (XLU slot idle), rather than a second DMA'd operand.
    lab_row = lab_ref[...]              # (1, n) int32
    lab_col = lab_row.T                 # (n, 1)
    eq = lab_col == lab_row             # (n, n) bool

    # Boolean-select epilogue (no float masks / casts). The reference zeroes the
    # diagonal before triu, so diagonal terms contribute exactly 0 -> use the
    # strict upper triangle.
    loss = jnp.where(eq, dw, jnp.maximum(jnp.float32(margin) - dw, 0.0))
    loss = jnp.where(col > row, loss, 0.0)

    out_ref[b, 0] = jnp.sum(loss)


def contrastive_loss_batched(embeddings, labels, margin=10.0):
    """embeddings: (B, n, p), labels: (B, n) int -> (B,) float32 losses.

    One pallas_call amortizes dispatch/DMA overhead over the B instances.
    """
    B, n, p = embeddings.shape
    lab = labels.astype(jnp.int32).reshape(B, 1, n)   # wrapper reshape = free plumbing

    kernel = functools.partial(_contrastive_loss_kernel, margin=float(margin))

    flops = B * (2 * n * n * p + 12 * n * n)
    bytes_accessed = B * (embeddings.dtype.itemsize * n * p + 4 * n + 4)

    out = pl.pallas_call(
        kernel,
        out_shape=jax.ShapeDtypeStruct((B, 1), jnp.float32),
        grid=(B,),
        in_specs=[
            # leading batch dim squeezed out of the kernel view
            pl.BlockSpec((None, n, p), lambda b: (b, 0, 0)),   # embeddings
            pl.BlockSpec((None, 1, n), lambda b: (b, 0, 0)),   # labels (single copy)
        ],
        # Whole (B, 1) scalar buffer resident in SMEM; each grid step fills slot b,
        # written back once at the end (no masked 1-lane VMEM stores per step).
        out_specs=pl.BlockSpec(memory_space=pltpu.MemorySpace.SMEM),
        # "arbitrary": the shared SMEM output buffer must not be split across TCs.
        # TODO(synk): for v7x megacore, block the output per-b and mark "parallel".
        compiler_params=pltpu.CompilerParams(dimension_semantics=("arbitrary",)),
        cost_estimate=pl.CostEstimate(
            flops=flops, transcendentals=0, bytes_accessed=bytes_accessed),
    )(embeddings, lab)
    return out[:, 0]


def contrastive_loss(embeddings, labels, margin=10.0):
    """embeddings: (n, p) float, labels: (n,) int -> scalar float32 loss."""
    return contrastive_loss_batched(embeddings[None], labels[None], margin=margin)[0]


def _reference_loss(embeddings, labels, margin=10.0):
    """Pure-JAX reference mirroring the PyTorch module."""
    x = embeddings.astype(jnp.float32)
    n, d = x.shape
    r = jnp.sum(x ** 2, axis=1, keepdims=True)
    s = r - 2.0 * (x @ x.T) + r.T
    s = s * (1.0 - jnp.eye(n, dtype=jnp.float32))
    s = jnp.maximum(s, 0.0)
    dw = s / d
    lab = labels.reshape(n, 1)
    pos = (lab == lab.T).astype(jnp.float32)
    neg = 1.0 - pos
    loss = dw * pos + jnp.maximum(margin - dw, 0.0) * neg
    loss = jnp.triu(loss)
    return jnp.sum(loss)


if __name__ == "__main__":
    key = jax.random.PRNGKey(0)
    k1, k2, k3, k4 = jax.random.split(key, 4)

    # Single-instance call matching the module: n=8 samples, p=32-dim embeddings.
    n, p = 8, 32
    embeddings = jax.random.normal(k1, (n, p), dtype=jnp.float32)
    labels = jax.random.randint(k2, (n,), 0, 3, dtype=jnp.int32)

    out = contrastive_loss(embeddings, labels, margin=10.0)
    out = jax.block_until_ready(out)
    ref = _reference_loss(embeddings, labels, margin=10.0)
    assert jnp.allclose(out, ref, rtol=1e-5, atol=1e-4), (out, ref)

    # Batched call: B independent loss instances in one pallas_call.
    B = 4
    embs = jax.random.normal(k3, (B, n, p), dtype=jnp.float32)
    labs = jax.random.randint(k4, (B, n), 0, 3, dtype=jnp.int32)
    outs = jax.block_until_ready(contrastive_loss_batched(embs, labs, margin=10.0))
    refs = jax.vmap(lambda e, l: _reference_loss(e, l, 10.0))(embs, labs)
    assert jnp.allclose(outs, refs, rtol=1e-5, atol=1e-4), (outs, refs)

    print("KERNEL_OK")
</pallas_src>

<mosaic_0001>
module attributes {stable_mosaic.version = 11 : i64} {
  func.func @_contrastive_loss_kernel(%arg0: i32, %arg1: memref<1x8x32xf32, #tpu.memory_space<vmem>>, %arg2: memref<1x1x8xi32, #tpu.memory_space<vmem>>, %arg3: memref<1x1xf32, #tpu.memory_space<smem>>) attributes {dimension_semantics = [#tpu.dimension_semantics<arbitrary>], iteration_bounds = array<i64: 1>, scalar_prefetch = 0 : i64, scratch_operands = 0 : i64, tpu.core_type = #tpu.core_type<tc>, window_params = [{transform_indices = @transform_0, window_bounds = array<i64: 1, 8, 32>}, {transform_indices = @transform_1, window_bounds = array<i64: 1, 1, 8>}, {transform_indices = @transform_2, window_bounds = array<i64: 1, 1>}]} {
    %c0 = arith.constant 0 : index
    %c0_0 = arith.constant 0 : index
    %c0_1 = arith.constant 0 : index
    %0 = vector.load %arg1[%c0, %c0_0, %c0_1] : memref<1x8x32xf32, #tpu.memory_space<vmem>>, vector<1x8x32xf32>
    %1 = vector.shape_cast %0 : vector<1x8x32xf32> to vector<8x32xf32>
    %cst = arith.constant dense<0.000000e+00> : vector<8x8xf32>
    %2 = tpu.matmul %1, %1, %cst {dimension_numbers = #tpu.dot_dimension_numbers<[1], [1], [0], [0], [0, 0, 1, 0], [], []>} : vector<8x32xf32>, vector<8x32xf32>, vector<8x8xf32> -> vector<8x8xf32>
    %3 = tpu.iota {dimensions = array<i32: 0>} : vector<8x8xi32>
    %4 = tpu.iota {dimensions = array<i32: 1>} : vector<8x8xi32>
    %5 = arith.cmpi eq, %3, %4 : vector<8x8xi32>
    %cst_2 = arith.constant 0.000000e+00 : f32
    %6 = vector.broadcast %cst_2 : f32 to vector<8x8xf32>
    %7 = arith.select %5, %2, %6 : vector<8x8xi1>, vector<8x8xf32>
    %cst_3 = arith.constant dense<0.000000e+00> : vector<8xf32>
    %8 = vector.multi_reduction <add>, %7, %cst_3 [1] : vector<8x8xf32> to vector<8xf32>
    %9 = vector.shape_cast %8 : vector<8xf32> to vector<8x1xf32>
    %cst_4 = arith.constant dense<0.000000e+00> : vector<8xf32>
    %10 = vector.multi_reduction <add>, %7, %cst_4 [0] : vector<8x8xf32> to vector<8xf32>
    %11 = vector.shape_cast %10 : vector<8xf32> to vector<1x8xf32>
    %cst_5 = arith.constant 2.000000e+00 : f32
    %12 = vector.broadcast %cst_5 : f32 to vector<8x8xf32>
    %13 = arith.mulf %12, %2 : vector<8x8xf32>
    %14 = vector.broadcast %9 : vector<8x1xf32> to vector<8x8xf32>
    %15 = arith.subf %14, %13 : vector<8x8xf32>
    %16 = vector.broadcast %11 : vector<1x8xf32> to vector<8x8xf32>
    %17 = arith.addf %15, %16 : vector<8x8xf32>
    %cst_6 = arith.constant 0.000000e+00 : f32
    %18 = vector.broadcast %cst_6 : f32 to vector<8x8xf32>
    %19 = arith.maximumf %17, %18 : vector<8x8xf32>
    %cst_7 = arith.constant 3.125000e-02 : f32
    %20 = vector.broadcast %cst_7 : f32 to vector<8x8xf32>
    %21 = arith.mulf %19, %20 : vector<8x8xf32>
    %c0_8 = arith.constant 0 : index
    %c0_9 = arith.constant 0 : index
    %c0_10 = arith.constant 0 : index
    %22 = vector.load %arg2[%c0_8, %c0_9, %c0_10] : memref<1x1x8xi32, #tpu.memory_space<vmem>>, vector<1x1x8xi32>
    %23 = vector.shape_cast %22 : vector<1x1x8xi32> to vector<1x8xi32>
    %24 = tpu.transpose %23, [1, 0] : vector<1x8xi32> -> vector<8x1xi32>
    %25 = vector.broadcast %24 : vector<8x1xi32> to vector<8x8xi32>
    %26 = vector.broadcast %23 : vector<1x8xi32> to vector<8x8xi32>
    %27 = arith.cmpi eq, %25, %26 : vector<8x8xi32>
    %cst_11 = arith.constant 1.000000e+01 : f32
    %28 = vector.broadcast %cst_11 : f32 to vector<8x8xf32>
    %29 = arith.subf %28, %21 : vector<8x8xf32>
    %cst_12 = arith.constant 0.000000e+00 : f32
    %30 = vector.broadcast %cst_12 : f32 to vector<8x8xf32>
    %31 = arith.maximumf %29, %30 : vector<8x8xf32>
    %32 = arith.select %27, %21, %31 : vector<8x8xi1>, vector<8x8xf32>
    %33 = arith.cmpi sgt, %4, %3 : vector<8x8xi32>
    %cst_13 = arith.constant 0.000000e+00 : f32
    %34 = vector.broadcast %cst_13 : f32 to vector<8x8xf32>
    %35 = arith.select %33, %32, %34 : vector<8x8xi1>, vector<8x8xf32>
    %36 = vector.shape_cast %35 : vector<8x8xf32> to vector<1x8x8xf32>
    %cst_14 = arith.constant dense<0.000000e+00> : vector<1xf32>
    %37 = vector.multi_reduction <add>, %36, %cst_14 [1, 2] : vector<1x8x8xf32> to vector<1xf32>
    %38 = vector.shape_cast %37 : vector<1xf32> to vector<1x1x1xf32>
    %39 = vector.extract %38[0, 0, 0] : f32 from vector<1x1x1xf32>
    %40 = arith.index_cast %arg0 : i32 to index
    %c0_15 = arith.constant 0 : index
    %41 = memref.load %arg3[%40, %c0_15] : memref<1x1xf32, #tpu.memory_space<smem>>
    memref.store %39, %arg3[%40, %c0_15] : memref<1x1xf32, #tpu.memory_space<smem>>
    return
  }
  func.func @transform_0(%arg0: i32) -> (i32, i32, i32) {
    %c0_i32 = arith.constant 0 : i32
    %c0_i32_0 = arith.constant 0 : i32
    %c0_i32_1 = arith.constant 0 : i32
    return %arg0, %c0_i32, %c0_i32_0 : i32, i32, i32
  }
  func.func @transform_1(%arg0: i32) -> (i32, i32, i32) {
    %c0_i32 = arith.constant 0 : i32
    %c0_i32_0 = arith.constant 0 : i32
    %c0_i32_1 = arith.constant 0 : i32
    return %arg0, %c0_i32, %c0_i32_0 : i32, i32, i32
  }
  func.func @transform_2(%arg0: i32) -> (i32, i32) {
    %c0_i32 = arith.constant 0 : i32
    %c0_i32_0 = arith.constant 0 : i32
    %c0_i32_1 = arith.constant 0 : i32
    return %c0_i32, %c0_i32_0 : i32, i32
  }
}

</mosaic_0001>

<bundles_post_ra>
// kernel: tpu_custom_call.1
= control target key start
LH: loop header
LB: loop body
LE: loop exit
PB: predicated region body
PF: predicated region fallthrough
CT: control target
= control target key end

     0   :  { %7 = vsyncpa [#allocation3], 0  ;;  %s266_s0 = inlined_call_operand.hbm [shape: f32[1,8,32], index: 0, kind: input, shape index: {}]   ;;  %s267_s1 = inlined_call_operand.hbm [shape: s32[1,1,8], index: 1, kind: input, shape index: {}]   ;;  %s268_s2 = inlined_call_operand.hbm [shape: f32[1,1], index: 2, kind: output, shape index: {}]  }
   0x1   :  { %8 = vsyncpa [#allocation6], 0 }
   0x2   :  { %9 = vsyncpa [#allocation4], 0  ;;  %s15_s11 = sshll.u32 %s266_s0, 4  ;;  %s236_s12 = smov [#allocation2]   ;;  %s16_s11 = int_to_ptr.hbm [resolvable:$true] %s15_s11 }
   0x3   :  { %s17_s13 = sshll.u32 %s236_s12, 4  ;;  %s26_s16 = sshll.u32 %s267_s1, 4  ;;  %s18_s13 = int_to_ptr.vmem [resolvable:$true] %s17_s13  ;;  %s27_s16 = int_to_ptr.hbm [resolvable:$true] %s26_s16 }
   0x4   :  { %20 = dma.hbm_to_vmem [thread:$0]  %s16_s11, 128, %s18_s13, [#allocation3]  }
   0x5   :  { %s237_s17 = smov [#allocation5]  }
   0x6   :  { %s28_s18 = sshll.u32 %s237_s17, 4  ;;  %s29_s18 = int_to_ptr.vmem [resolvable:$true] %s28_s18 }
   0x7   :  { %31 = dma.hbm_to_vmem [thread:$0]  %s27_s16, 16, %s29_s18, [#allocation6]  }
   0x8   :  { %230 = dma.done.wait [#allocation3], 128  }
   0x9   :  { %231 = vsyncadd [#allocation3], 4294967168 }
   0xa   :  { %232 = dma.done.wait [#allocation6], 16  }
   0xb   :  { %233 = vsyncadd [#allocation6], 4294967280  ;;  %vm41_vm0 = vcmask 261120   ;;  %v86_v0 = vld [vmem:[#allocation5] sm:$0x1]  ;;  %v40_v1 = vld [vmem:[#allocation2] sm:$0xff]  ;;  %v65_v3 = vlaneseq }
   0xc   :  { %87 = vxpose.xlu0.b32.start.end [1/1] (short) (narrow) %v86_v0, 8  ;;  %159 = vmatpush.xpose.msk.msra.mxu0 %vm41_vm0, %v40_v1  ;;  %v238_v2 = vmov 0   ;;  %vm71_vm2 = vcmask 64512   ;;  %v169_v23 = vld [vmem:[#allocation5] ss:$0 sm:$0xff]  ;;  %s147_s19 = sshll.u32 %s268_s2, 4  ;;  %s148_s19 = int_to_ptr.hbm [resolvable:$true] %s147_s19 }
   0xd   :  { %167 = vset.pattern.permute.xlu1 %v238_v2  ;;  %v66_v4 = vshrl.u32 %v65_v3, 7  ;;  %v68_v5 = vand.u32 127, %v65_v3  ;;  %s239_s21 = smov [#allocation7]  }
   0xf   :  { %160 = vmatmul.msk.f32.vlgmr.msra.gmra.mxu0 %vm41_vm0, %v40_v1  ;;  %vm69_vm1 = vcmp.eq.s32.totalorder %v66_v4, %v68_v5  ;;  %vm127_vm3 = vcmp.gt.s32.totalorder %v68_v5, %v66_v4 }
  0x73   :  { %168 = vset.pattern.permute.xlu0 %v238_v2 }
  0x8c   :  { %v62_v6 = vpop.f32.mrf.mxu0 }
  0x8d   :  { %v70_v7 = vsel %vm69_vm1, %v62_v6, 0.0  ;;  %v81_v15 = vmul.f32 2.0, %v62_v6 }
  0x8e   :  { %v72_v8 = vsel %vm71_vm2, %v70_v7, 0.0 }
  0x8f   :  { %73 = vadd.xlane.f32.xlu0 %v72_v8  ;;  %v75_v10 = vrot.slane %v72_v8, 4 }
  0x91   :  { %v76_v11 = vadd.f32 %v75_v10, %v72_v8 }
  0x93   :  { %v77_v12 = vrot.slane %v76_v11, 2 }
  0x95   :  { %v78_v13 = vadd.f32 %v77_v12, %v76_v11 }
  0x97   :  { %v79_v14 = vrot.slane %v78_v13, 1 }
  0x99   :  { %v80_v17 = vadd.f32 %v79_v14, %v78_v13 }
  0xb0   :  { %v103_v9 = vpop.trf.xlu0 }
  0xb1   :  { %120 = vperm.xlu1 %167, %v103_v9  }
 0x102   :  { %v74_v16 = vpop.xlane.xlu0 %73 }
 0x103   :  { %v82_v18 = vsub.f32 %v74_v16, %v81_v15 }
 0x105   :  { %v83_v19 = vadd.f32 %v82_v18, %v80_v17 }
 0x107   :  { %v84_v20 = vmax.f32 %v83_v19, 0.0 }
 0x109   :  { %v85_v21 = vmul.f32 0.03125, %v84_v20 }
 0x10b   :  { %v124_v22 = vsub.f32 10.0, %v85_v21 }
 0x10d   :  { %v125_v24 = vmax.f32 %v124_v22, 0.0 }
 0x123   :  { %v121_v25 = vpop.permute.xlu1 %120 }
 0x124   :  { %vm123_vm4 = vcmp.eq.s32.totalorder %v121_v25, %v169_v23 }
 0x125   :  { %v126_v26 = vsel %vm123_vm4, %v85_v21, %v125_v24 }
 0x126   :  { %v128_v27 = vsel %vm127_vm3, %v126_v26, 0.0 }
 0x127   :  { %v129_v28 = vsel %vm71_vm2, %v128_v27, 0.0 }
 0x128   :  { %130 = vadd.xlane.f32.xlu1 %v129_v28 }
 0x19b   :  { %v131_v29 = vpop.xlane.xlu1 %130 }
 0x19c   :  { %v132_v30 = vrot.slane %v131_v29, 4 }
 0x19e   :  { %v133_v31 = vadd.f32 %v132_v30, %v131_v29 }
 0x1a0   :  { %v134_v32 = vrot.slane %v133_v31, 2 }
 0x1a2   :  { %v135_v33 = vadd.f32 %v134_v32, %v133_v31 }
 0x1a4   :  { %v136_v34 = vrot.slane %v135_v33, 1 }
 0x1a6   :  { %v137_v35 = vadd.f32 %v136_v34, %v135_v33 }
 0x1a8   :  { %161 = vpush %v137_v35 }
 0x1d9   :  { %s162_s20 = spop %161 }
 0x1da   :  { %141 = sst [smem:[#allocation7]] %s162_s20 }
 0x1db   :  { %150 = dma.smem_to_hbm %s239_s21, 16, %s148_s19, [#allocation4]  }
 0x1dc   :  { %234 = dma.done.wait [#allocation4], 16  }
 0x1dd   :  { %235 = vsyncadd [#allocation4], 4294967280 }
 0x1de   :  { %155 = sfence }
 0x1df   :  { %156 = vsyncpa [#allocation3], 1 }
 0x1e0   :  { %157 = vsyncpa [#allocation6], 1 }
 0x1e1   :  { %158 = vsyncpa [#allocation4], 1 }

</bundles_post_ra>
